<compile_context>
chip_gen: v7x
topology: tpu7x:2x2x1
jax: 0.10.0
libtpu: 0.0.40
codegen_flags: <defaults>
</compile_context>

<pallas_src>
import jax
import jax.numpy as jnp
from jax import lax
from jax.experimental import pallas as pl
from jax.experimental.pallas import tpu as pltpu


def _round_up(x: int, m: int) -> int:
    return (x + m - 1) // m * m


def _make_kernel(implicit: bool, num_channels: int):
    C = num_channels

    def kernel(x_ref, o_ref):
        # x_ref block: (1, C, TS) ; o_ref block: (1, 1, TS)
        csum = None
        if C <= 8:
            # Small channel counts: vectorized iota path (few live (C,TS) vregs).
            x = x_ref[0]                                            # (C, TS), native dtype
            chan_idx = lax.broadcasted_iota(jnp.int32, x.shape, 0)  # (C, TS)
            pmax = jnp.max(x, axis=0, keepdims=True)                # (1, TS)
            # first index attaining the max (matches torch argmax tie-breaking)
            idx = jnp.min(jnp.where(x == pmax, chan_idx, C),
                          axis=0, keepdims=True)                    # (1, TS) int32
            if implicit:
                csum = jnp.sum(x, axis=0, keepdims=True)            # (1, TS)
        else:
            # Larger C: running max/argmax scan keeps live state at O(TS) vregs,
            # so TS can stay large without spilling.  C is static -> unrolled.
            pmax = x_ref[0, 0:1, :]                                 # (1, TS)
            idx = jnp.zeros(pmax.shape, jnp.int32)
            if implicit:
                csum = pmax
            for c in range(1, C):
                row = x_ref[0, c:c + 1, :]
                take = row > pmax            # strict '>' keeps the first max on ties
                pmax = jnp.where(take, row, pmax)
                idx = jnp.where(take, c, idx)
                if implicit:
                    csum = csum + row

        if implicit:
            imp = (jnp.ones_like(csum) - csum)                      # (1, TS)
            lab = jnp.where(pmax < imp, 0, idx + 1)
        else:
            lab = idx

        o_ref[0] = lab.astype(o_ref.dtype)

    return kernel


def onehot_to_label(x, implicit=False, dtype=jnp.int32, tile_lanes=32768):
    """x: (B, C, *spatial) -> (B, 1, *spatial) labels (default int32)."""
    B, C = x.shape[0], x.shape[1]
    spatial = x.shape[2:]
    S = 1
    for d in spatial:
        S *= d
    xf = x.reshape(B, C, S)

    # --- Lane-dense spatial tiling -------------------------------------------
    # Pad S to a multiple of 128 (unmasked stores), then choose a tile size TS
    # (multiple of 128) that divides the padded extent.  Cap TS so the
    # double-buffered (1, C, TS) input block stays well inside the scoped VMEM
    # budget on every generation (v5e 16 MiB, v6e/v7x 32 MiB scoped).
    itemsize = jnp.dtype(xf.dtype).itemsize
    max_ts_vmem = max(128, ((2 * 1024 * 1024) // (C * itemsize)) // 128 * 128)
    S128 = _round_up(S, 128)
    TS = min(int(tile_lanes), max_ts_vmem, S128)
    TS = max(128, TS // 128 * 128)
    S_pad = _round_up(S128, TS)
    if S_pad != S:
        xf = jnp.pad(xf, ((0, 0), (0, 0), (0, S_pad - S)))

    grid = (B, S_pad // TS)
    out = pl.pallas_call(
        _make_kernel(implicit, C),
        out_shape=jax.ShapeDtypeStruct((B, 1, S_pad), jnp.int32),
        grid=grid,
        in_specs=[pl.BlockSpec((1, C, TS), lambda b, s: (b, 0, s))],
        out_specs=pl.BlockSpec((1, 1, TS), lambda b, s: (b, 0, s)),
        compiler_params=pltpu.CompilerParams(
            dimension_semantics=("parallel", "parallel")),
    )(xf)

    out = out[:, :, :S].reshape((B, 1) + spatial)
    if dtype is not None and jnp.dtype(dtype) != jnp.dtype(jnp.int32):
        out = out.astype(dtype)
    return out


def _reference(x, implicit=False):
    if implicit:
        imp = 1.0 - jnp.sum(x, axis=1, keepdims=True)
        pmax = jnp.max(x, axis=1, keepdims=True)
        idx = jnp.argmax(x, axis=1, keepdims=True).astype(jnp.int32) + 1
        return jnp.where(pmax < imp, 0, idx)
    return jnp.argmax(x, axis=1, keepdims=True).astype(jnp.int32)


if __name__ == "__main__":
    key = jax.random.PRNGKey(0)

    # 1) explicit (argmax) mode, small channel count
    B, C, H, W = 2, 4, 16, 16
    logits = jax.random.normal(key, (B, C, H, W), dtype=jnp.float32)
    x = jax.nn.softmax(logits, axis=1)          # soft one-hot over channels
    out_explicit = onehot_to_label(x, implicit=False)
    jax.block_until_ready(out_explicit)
    assert out_explicit.shape == (B, 1, H, W)
    assert bool(jnp.all(out_explicit == _reference(x, implicit=False)))

    # 2) implicit mode: drop one channel so an implicit background class exists
    x_impl = x[:, : C - 1]
    out_implicit = onehot_to_label(x_impl, implicit=True)
    jax.block_until_ready(out_implicit)
    assert out_implicit.shape == (B, 1, H, W)
    assert bool(jnp.all(out_implicit == _reference(x_impl, implicit=True)))

    # 3) larger channel count (running-scan path) + ragged spatial size
    #    (exercises the pad-to-128 / slice-back path)
    key2 = jax.random.PRNGKey(1)
    B2, C2, H2, W2 = 2, 12, 5, 7
    logits2 = jax.random.normal(key2, (B2, C2, H2, W2), dtype=jnp.float32)
    x2 = jax.nn.softmax(logits2, axis=1)
    out2 = onehot_to_label(x2, implicit=False)
    jax.block_until_ready(out2)
    assert out2.shape == (B2, 1, H2, W2)
    assert bool(jnp.all(out2 == _reference(x2, implicit=False)))

    print("KERNEL_OK")
</pallas_src>

<mosaic_0001>
module attributes {stable_mosaic.version = 11 : i64} {
  func.func @kernel(%arg0: i32, %arg1: i32, %arg2: memref<1x4x256xf32, #tpu.memory_space<vmem>>, %arg3: memref<1x1x256xi32, #tpu.memory_space<vmem>>) attributes {dimension_semantics = [#tpu.dimension_semantics<parallel>, #tpu.dimension_semantics<parallel>], iteration_bounds = array<i64: 2, 1>, scalar_prefetch = 0 : i64, scratch_operands = 0 : i64, tpu.core_type = #tpu.core_type<tc>, window_params = [{transform_indices = @transform_0, window_bounds = array<i64: 1, 4, 256>}, {transform_indices = @transform_1, window_bounds = array<i64: 1, 1, 256>}]} {
    %c0 = arith.constant 0 : index
    %c0_0 = arith.constant 0 : index
    %c0_1 = arith.constant 0 : index
    %0 = vector.load %arg2[%c0, %c0_0, %c0_1] : memref<1x4x256xf32, #tpu.memory_space<vmem>>, vector<1x4x256xf32>
    %1 = vector.shape_cast %0 : vector<1x4x256xf32> to vector<4x256xf32>
    %2 = tpu.iota {dimensions = array<i32: 0>} : vector<4x256xi32>
    %cst = arith.constant dense<0xFF800000> : vector<256xf32>
    %3 = vector.multi_reduction <maximumf>, %1, %cst [0] : vector<4x256xf32> to vector<256xf32>
    %4 = vector.shape_cast %3 : vector<256xf32> to vector<1x256xf32>
    %5 = vector.broadcast %4 : vector<1x256xf32> to vector<4x256xf32>
    %6 = arith.cmpf oeq, %1, %5 : vector<4x256xf32>
    %c4_i32 = arith.constant 4 : i32
    %7 = vector.broadcast %c4_i32 : i32 to vector<4x256xi32>
    %8 = arith.select %6, %2, %7 : vector<4x256xi1>, vector<4x256xi32>
    %cst_2 = arith.constant dense<2147483647> : vector<256xi32>
    %9 = vector.multi_reduction <minsi>, %8, %cst_2 [0] : vector<4x256xi32> to vector<256xi32>
    %10 = vector.shape_cast %9 : vector<256xi32> to vector<1x256xi32>
    %c0_3 = arith.constant 0 : index
    %c0_4 = arith.constant 0 : index
    %c0_5 = arith.constant 0 : index
    %11 = vector.load %arg3[%c0_3, %c0_4, %c0_5] : memref<1x1x256xi32, #tpu.memory_space<vmem>>, vector<1x1x256xi32>
    %12 = vector.shape_cast %11 : vector<1x1x256xi32> to vector<1x256xi32>
    %13 = vector.shape_cast %10 : vector<1x256xi32> to vector<1x1x256xi32>
    tpu.vector_store %arg3[%c0_3, %c0_4, %c0_5], %13 {strides = array<i32>} : memref<1x1x256xi32, #tpu.memory_space<vmem>>, vector<1x1x256xi32>,
    return
  }
  func.func @transform_0(%arg0: i32, %arg1: i32) -> (i32, i32, i32) {
    %c0_i32 = arith.constant 0 : i32
    %c0_i32_0 = arith.constant 0 : i32
    return %arg0, %c0_i32, %arg1 : i32, i32, i32
  }
  func.func @transform_1(%arg0: i32, %arg1: i32) -> (i32, i32, i32) {
    %c0_i32 = arith.constant 0 : i32
    %c0_i32_0 = arith.constant 0 : i32
    return %arg0, %c0_i32, %arg1 : i32, i32, i32
  }
}

</mosaic_0001>

<bundles_post_ra>
// kernel: tpu_custom_call.1
= control target key start
LH: loop header
LB: loop body
LE: loop exit
PB: predicated region body
PF: predicated region fallthrough
CT: control target
= control target key end

     0   :  { %6 = vsyncpa [#allocation3], 0  ;;  %s716_s0 = inlined_call_operand.hbm [shape: f32[2,4,256], index: 0, kind: input, shape index: {}]   ;;  %s717_s1 = inlined_call_operand.hbm [shape: s32[2,1,256], index: 1, kind: output, shape index: {}]  }
   0x1   :  { %8 = vsyncpa [#allocation3 + $0x1], 0 }
   0x2   :  { %9 = vsyncpa [#allocation4], 0 }
   0x3   :  { %11 = vsyncpa [#allocation4 + $0x1], 0  ;;  %s539_s6 = smov 0   ;;  %s541_s7 = smov 0  }
   0x4   :  { %s543_s8 = smov 0   ;;  %s545_s9 = smov 0  }
   0x5   :  { %s547_s10 = smov 0   ;;  %s549_s11 = smov 0  }
   0x6 LB: > { %s329_s12 = sadd.s32 4294967295, %s523_s11   ;;  %s330_s13 = sadd.s32 4294967294, %s523_s11   ;;  %s523_s11 = sphi %s549_s11, %s17_s11   ;;  %s519_s10 = sphi %s547_s10, %s733_s10   ;;  %s515_s9 = sphi %s545_s9, %s732_s9   ;;  %s511_s8 = sphi %s543_s8, %s731_s8   ;;  %s507_s7 = sphi %s541_s7, %s730_s7   ;;  %s503_s6 = sphi %s539_s6, %s729_s6  }
   0x7   : > { %s29_s14 = sadd.s32 1, %s519_s10  ;;  %s38_s15 = sadd.s32 1, %s511_s8 }
   0x8   : > { %p31_p0 = scmp.ge.s32.totalorder %s29_s14, 2  ;;  %p45_p1 = scmp.ne.s32.totalorder %s511_s8, %s507_s7 }
   0x9   : > { %p46_p2 = scmp.eq.s32.totalorder %s523_s11, 0  ;;  %p51_p3 = scmp.ne.s32.totalorder %s507_s7, %s503_s6 }
   0xa   : > { %s735_s14 = smov (%p31_p0, %s29_s14), 0  ;;  %p52_p5 = scmp.eq.s32.totalorder %s329_s12, 0 }
   0xb   : > { %p580_p4 = por %p46_p2, %p45_p1  ;;  %s33_s17 = ssub.s32 %s519_s10, %s735_s14 }
   0xc   : > { %p77_p6 = scmp.eq.s32.totalorder %s329_s12, 1  ;;  %p36_p7 = scmp.eq.s32.totalorder %s33_s17, 0 }
   0xd   : > { %p586_p8 = por %p52_p5, %p51_p3  ;;  %p83_p10 = scmp.eq.s32.totalorder %s330_s13, 1 }
   0xe   : > { %p590_p9 = por %p77_p6, %p45_p1  ;;  %p358_p13 = scmp.lt.s32.totalorder %s523_s11, 2 }
   0xf   : > { %s595_s20 = scalar_select %p36_p7, %s511_s8, %s38_s15  }
  0x10   : > { %s721_s19 = scalar_select %p590_p9, 1, 0 }
  0x11   : > { %p597_p11 = por %p83_p10, %p51_p3  ;;  %s103_s22 = sand.u32 1, %s511_s8  }
  0x12   : > { %s333_s23 = sshll.u32 %s103_s22, 3  ;;  %s344_s24 = sshll.u32 %s519_s10, 7 }
  0x13   : > { %s722_s21 = scalar_select %p597_p11, 1, 0 }
  0x14   : > { %s608_s27 = scalar_lea.hbm %s716_s0, %s344_s24  ;;  %s107_s28 = scalar_lea.vmem [#allocation2], %s333_s23 }
  0x15   : > { %s117_s29 = sshll.u32 %s107_s28, 4  ;;  %p614_p0 = pnand %p358_p13, %p580_p4  ;;  %s610_s29 = int_to_ptr.vmem [resolvable:$true] %s117_s29 }
  0x16   : > { %s104_s2 = scalar_lea.sflag [#allocation3], %s103_s22  ;;  %s411_s3 = scalar_lea.hbm %s608_s27, 128 }
  0x17   : > { %p412_p3 = scmp.ne.s32.totalorder %s608_s27, %s411_s3  ;;  %p413_p5 = pneg %p614_p0 }
  0x18   : > { %s416_s12 = scalar_lea.hbm %s716_s0, 256  ;;  %p417_p4 = scmp.lt.u32.totalorder %s608_s27, %s716_s0 }
  0x19   : > { %p414_p6 = pnand %p413_p5, %p412_p3  ;;  %p418_p10 = scmp.lt.u32.totalorder %s416_s12, %s411_s3 }
  0x1a   : > { %p420_p12 = scmp.lt.u32.totalorder %s411_s3, %s608_s27 }
  0x1b   : > { %p415_p7 = pneg %p414_p6  ;;  %p419_p13 = por %p418_p10, %p417_p4 }
  0x1d   : > { %p421_p1 = por %p420_p12, %p419_p13 }
  0x1f   : > { %p422_p2 = pnand %p421_p1, %p415_p7 }
  0x21   : > { %425 = shalt.err (!%p422_p2)
}
  0x22   : > { %s426_s16 = scalar_lea.vmem %s610_s29, 128  ;;  %s525_s17 = smov [#allocation2]  }
  0x23   : > { %p427_p3 = scmp.ne.s32.totalorder %s610_s29, %s426_s16  ;;  %s431_s22 = sshll.u32 %s525_s17, 4  ;;  %s432_s22 = int_to_ptr.vmem [resolvable:$false] %s431_s22 }
  0x24   : > { %s433_s23 = scalar_lea.vmem %s432_s22, 256  ;;  %p434_p9 = scmp.lt.s32.totalorder %s610_s29, %s432_s22 }
  0x25   : > { %p429_p6 = pnand %p427_p3, %p413_p5  ;;  %p435_p4 = scmp.lt.s32.totalorder %s433_s23, %s426_s16 }
  0x27   : > { %p430_p11 = pneg %p429_p6  ;;  %p436_p10 = por %p435_p4, %p434_p9 }
  0x29   : > { %p437_p12 = pnand %p436_p10, %p430_p11 }
  0x2b   : > { %440 = shalt.err (!%p437_p12)
}
  0x2c   : > { %353 = dma.hbm_to_vmem [thread:$0]  (!%p614_p0), %s608_s27, 128, %s610_s29, %s104_s2  }
  0x2d   : > { %p724_p1 = scmp.lt.s32.totalorder %s523_s11, 3  ;;  %p725_p2 = scmp.ge.s32.totalorder %s523_s11, 1 }
  0x2f   : > { %p123_p5 = pnand %p725_p2, %p724_p1 }
  0x30   : > { %s650_s24 = sand.u32 (!%p123_p5), 1, %s507_s7  }
  0x31   : > { %126 = sbr.rel (%p123_p5) target bundleno = 112 (0x70), region = 24  ;;  %s337_s25 = sshll.u32 (!%p123_p5), %s650_s24, 3 }
  0x32   : > { %s129_s26 = scalar_lea.sflag (!%p123_p5), [#allocation3], %s650_s24  ;;  %s132_s28 = scalar_lea.vmem (!%p123_p5), [#allocation2], %s337_s25 }
  0x38   : > { %494 = dma.done.wait (%p586_p8), %s129_s26, 128  }
  0x39   : > { %496 = vsyncadd (%p586_p8), %s129_s26, 4294967168  ;;  %vm159_vm0 = vcmask 1043456   ;;  %v153_v0 = vld [vmem:[%s132_s28] sm:$0xff]  ;;  %v154_v5 = vlaneseq  ;;  %v526_v6 = vmov 839922192   ;;  %s338_s18 = sshll.u32 %s650_s24, 1 }
  0x3a   : > { %v157_v1 = vcombine.high %v153_v0, %v153_v0  ;;  %v160_v2 = vsel %vm159_vm0, %v153_v0, -inf  ;;  %v180_v7 = vunpack.c.l.s4 %v526_v6  ;;  %v527_v32 = vmov 1966171168   ;;  %s150_s27 = scalar_lea.vmem [#allocation5], %s338_s18  ;;  %s345_s30 = sshll.u32 %s515_s9, 5 }
  0x3b   : > { %v161_v3 = vrot.slane %v160_v2, 4  ;;  %v155_v12 = vshrl.u32 %v154_v5, 7  ;;  %v210_v33 = vunpack.c.l.s4 %v527_v32  ;;  %s245_s29 = sshll.u32 %s150_s27, 4  ;;  %vm225_vm8 = vcmp.lt.s32.totalorder %v154_v5, 256  ;;  %s669_s4 = scalar_lea.hbm %s717_s1, %s345_s30  ;;  %s664_s29 = int_to_ptr.vmem [resolvable:$true] %s245_s29 }
  0x3c   : > { %v167_v4 = vsel %vm159_vm0, %v157_v1, -inf  ;;  %v181_v13 = vunpack.c.0.s8 %v180_v7  ;;  %s229_s5 = scalar_lea.sflag [#allocation4], %s650_s24  ;;  %s441_s12 = scalar_lea.vmem %s664_s29, 32 }
  0x3d   : > { %v162_v8 = vmax.f32 %v160_v2, %v161_v3  ;;  %v168_v9 = vrot.slane %v167_v4, 4  ;;  %v211_v38 = vunpack.c.0.s8 %v210_v33  ;;  %p442_p8 = scmp.ne.s32.totalorder %s664_s29, %s441_s12  ;;  %p726_p9 = scmp.ne.s32.totalorder %s721_s19, 0 }
  0x3e   : > { %v184_v18 = vsub.s32 %v181_v13, %v155_v12  ;;  %s528_s9 = smov [#allocation5]  }
  0x3f   : > { %v163_v10 = vrot.slane %v162_v8, 2  ;;  %v169_v11 = vmax.f32 %v167_v4, %v168_v9  ;;  %v214_v42 = vsub.s32 %v211_v38, %v155_v12  ;;  %p443_p11 = pnand %p442_p8, %p726_p9  ;;  %s445_s13 = sshll.u32 %s528_s9, 4  ;;  %s446_s13 = int_to_ptr.vmem [resolvable:$false] %s445_s13 }
  0x40   : > { %v185_v22 = vrot.slane %v155_v12, %v184_v18  ;;  %s447_s15 = scalar_lea.vmem %s446_s13, 64  ;;  %p448_p7 = scmp.lt.s32.totalorder %s664_s29, %s446_s13 }
  0x41   : > { %v164_v14 = vmax.f32 %v162_v8, %v163_v10  ;;  %v170_v15 = vrot.slane %v169_v11, 2  ;;  %p444_p0 = pneg %p443_p11  ;;  %p449_p13 = scmp.lt.s32.totalorder %s447_s15, %s441_s12 }
  0x43   : > { %v165_v16 = vrot.slane %v164_v14, 1  ;;  %v171_v17 = vmax.f32 %v169_v11, %v170_v15  ;;  %p450_p3 = por %p449_p13, %p448_p7 }
  0x45   : > { %v166_v19 = vmax.f32 %v164_v14, %v165_v16  ;;  %v172_v20 = vrot.slane %v171_v17, 1  ;;  %p451_p6 = pnand %p450_p3, %p444_p0 }
  0x47   : > { %v173_v21 = vmax.f32 %v171_v17, %v172_v20 }
  0x49   : > { %v176_v23 = vcombine.low %v166_v19, %v173_v21 }
  0x4b   : > { %vm178_vm1 = vcmp.eq.f32.partialorder %v153_v0, %v176_v23 }
  0x4c   : > { %v186_v24 = vsel %vm178_vm1, %v185_v22, 4 }
  0x4d   : > { %v187_v25 = vcombine.high %v186_v24, %v186_v24  ;;  %v188_v26 = vsel %vm159_vm0, %v186_v24, 2147483647 }
  0x4e   : > { %v189_v27 = vrot.slane %v188_v26, 4 }
  0x4f   : > { %v198_v28 = vsel %vm159_vm0, %v187_v25, 2147483647 }
  0x50   : > { %vm190_vm2 = vcmp.lt.s32.totalorder %v188_v26, %v189_v27  ;;  %v199_v29 = vrot.slane %v198_v28, 4 }
  0x51   : > { %v191_v30 = vsel %vm190_vm2, %v188_v26, %v189_v27 }
  0x52   : > { %v192_v31 = vrot.slane %v191_v30, 2  ;;  %vm200_vm3 = vcmp.lt.s32.totalorder %v198_v28, %v199_v29 }
  0x53   : > { %v201_v34 = vsel %vm200_vm3, %v198_v28, %v199_v29 }
  0x54   : > { %vm193_vm4 = vcmp.lt.s32.totalorder %v191_v30, %v192_v31  ;;  %v202_v35 = vrot.slane %v201_v34, 2 }
  0x55   : > { %v194_v36 = vsel %vm193_vm4, %v191_v30, %v192_v31 }
  0x56   : > { %v195_v37 = vrot.slane %v194_v36, 1  ;;  %vm203_vm5 = vcmp.lt.s32.totalorder %v201_v34, %v202_v35 }
  0x57   : > { %v204_v39 = vsel %vm203_vm5, %v201_v34, %v202_v35 }
  0x58   : > { %vm196_vm6 = vcmp.lt.s32.totalorder %v194_v36, %v195_v37  ;;  %v205_v40 = vrot.slane %v204_v39, 1 }
  0x59   : > { %v197_v41 = vsel %vm196_vm6, %v194_v36, %v195_v37 }
  0x5a   : > { %vm206_vm7 = vcmp.lt.s32.totalorder %v204_v39, %v205_v40 }
  0x5b   : > { %v207_v43 = vsel %vm206_vm7, %v204_v39, %v205_v40 }
  0x5c   : > { %v208_v44 = vcombine.low %v197_v41, %v207_v43 }
  0x5e   : > { %v215_v45 = vrot.slane %v208_v44, %v214_v42 }
  0x60   : > { %v222_v46 = vrot.slane %v215_v45, %v214_v42 }
  0x62   : > { %227 = vst.msk [vmem:[%s150_s27] sm:$0x3] %vm225_vm8, %v222_v46 }
  0x63   : > { %454 = shalt.err (!%p451_p6)
}
  0x64   : > { %s455_s16 = scalar_lea.hbm %s669_s4, 32  ;;  %s459_s23 = scalar_lea.hbm %s717_s1, 64 }
  0x65   : > { %p456_p4 = scmp.ne.s32.totalorder %s669_s4, %s455_s16  ;;  %p460_p1 = scmp.lt.u32.totalorder %s669_s4, %s717_s1 }
  0x66   : > { %p461_p2 = scmp.lt.u32.totalorder %s459_s23, %s455_s16  ;;  %p463_p8 = scmp.lt.u32.totalorder %s455_s16, %s669_s4 }
  0x67   : > { %p457_p10 = pnand %p456_p4, %p726_p9 }
  0x68   : > { %p462_p5 = por %p461_p2, %p460_p1 }
  0x69   : > { %p458_p12 = pneg %p457_p10 }
  0x6a   : > { %p464_p11 = por %p463_p8, %p462_p5 }
  0x6c   : > { %p465_p0 = pnand %p464_p11, %p458_p12 }
  0x6e   : > { %468 = shalt.err (!%p465_p0)
}
  0x6f   : > { %348 = dma.vmem_to_hbm [thread:$0]  (%p726_p9), %s664_s29, 32, %s669_s4, %s229_s5  }
  0x70 PF: > { %s257_s26 = sand.u32 1, %s503_s6   ;;  %p727_p7 = scmp.ne.s32.totalorder %s722_s21, 0 }
  0x71   : > { %p728_p13 = scmp.ge.s32.totalorder %s523_s11, 2  ;;  %s258_s28 = scalar_lea.sflag [#allocation4], %s257_s26 }
  0x73   : > { %p355_p3 = pnand %p728_p13, %p727_p7 }
  0x75   : > { %498 = dma.done.wait (!%p355_p3), %s258_s28, 32  }
  0x76   : > { %500 = vsyncadd (!%p355_p3), %s258_s28, 4294967264  ;;  %s17_s11 = sadd.s32 1, %s523_s11   ;;  %s729_s6 = smov %s507_s7 }
  0x77   : > { %p14_p6 = scmp.ge.s32.totalorder %s17_s11, 4   ;;  %s730_s7 = smov %s511_s8 }
  0x78   : > { %s731_s8 = smov %s595_s20  ;;  %s732_s9 = smov %s519_s10 }
  0x79   : > { %s733_s10 = smov %s735_s14  ;;  %16 = sbr.rel (!%p14_p6) target bundleno = 6 (0x6), region = 69 }
  0x80   :  { %263 = vsyncpa [#allocation3], 1 }
  0x81   :  { %265 = vsyncpa [#allocation3 + $0x1], 1 }
  0x82   :  { %266 = vsyncpa [#allocation4], 1 }
  0x83   :  { %268 = vsyncpa [#allocation4 + $0x1], 1 }

</bundles_post_ra>
